<compile_context>
chip_gen: v7x
topology: tpu7x:2x2x1
jax: 0.10.0
libtpu: 0.0.40
codegen_flags: <defaults>
</compile_context>

<pallas_src>
import functools

import jax
import jax.numpy as jnp
from jax import lax
from jax.experimental import pallas as pl
from jax.experimental.pallas import tpu as pltpu

_BN_EPS = 1e-5
_VMEM_LIMIT = 32 * 1024 * 1024


def _round_up(v, m):
    return (v + m - 1) // m * m


def _choose_tile_hw(hw, k_dim, c_out):
    """Pick an HW tile (lane axis) large enough to be roofline-bound, VMEM-safe."""
    hw128 = _round_up(hw, 128)
    budget = 8 * 1024 * 1024  # bytes for the dominant double-buffered f32 streams
    t = budget // max(1, 4 * (k_dim + 2 * c_out) * 2)
    t = max(128, (t // 128) * 128)
    return min(t, 16384, hw128)


# ---------------------------------------------------------------------------
# Pass 1: conv matmul per tile.  Writes lane-dense y = (1, C_out, tile_hw) plus
# per-tile partial sum / sum-of-squares (reduced in the wrapper -> fully parallel
# grid, dual-TC capable, better summation accuracy than one resident accumulator).
# ---------------------------------------------------------------------------
def _conv_stats_kernel(p_ref, w_ref, y_ref, sum_ref, sq_ref):
    c_out = w_ref.shape[0]
    # (C_out, K) @ (K, tile_hw) -> (C_out, tile_hw); HW (large) is the lane axis.
    y = jnp.dot(w_ref[...], p_ref[0], preferred_element_type=jnp.float32)
    y_ref[0] = y.astype(y_ref.dtype)
    sum_ref[...] = jnp.sum(y, axis=1, keepdims=True).reshape(1, 1, c_out, 1)
    sq_ref[...] = jnp.sum(y * y, axis=1, keepdims=True).reshape(1, 1, c_out, 1)


# ---------------------------------------------------------------------------
# Pass 2: folded BN affine (one FMA) + sigmoid over the stored y tile.
# Reads only 8 rows per tile (no matmul, no pT re-read); lane-dense stores.
# ---------------------------------------------------------------------------
def _bn_sigmoid_kernel(y_ref, scale_ref, shift_ref, o_ref):
    z = y_ref[0] * scale_ref[...] + shift_ref[...]   # gamma*(y-mean)/std + beta, folded
    # exp on EUP; exact reciprocal (approx vrcp may miss the 1e-5 tolerance).
    o_ref[0] = pl.reciprocal(1.0 + jnp.exp(-z), approx=False).astype(o_ref.dtype)


def _extract_patches(x, kh, kw, padding):
    """x: (N, C, H, W) -> patches (N, C*kh*kw, Ho*Wo) with K order (c, dy, dx).

    Built by stacking the kh*kw shifted views on a new axis right after C, so the
    final reshape is contiguous -- no large HBM transpose of the inflated matrix.
    """
    n, c, h, w = x.shape
    xp = jnp.pad(x, ((0, 0), (0, 0), (padding, padding), (padding, padding)))
    ho = h + 2 * padding - kh + 1
    wo = w + 2 * padding - kw + 1
    views = [xp[:, :, dy:dy + ho, dx:dx + wo] for dy in range(kh) for dx in range(kw)]
    cols = jnp.stack(views, axis=2)                       # (N, C, kh*kw, Ho, Wo)
    patches = cols.reshape(n, c * kh * kw, ho * wo)       # pure reshape
    return patches, ho, wo


@functools.partial(jax.jit, static_argnames=("kernel_size", "padding", "tile_hw"))
def asb_forward(x, conv_w, conv_b, bn_gamma, bn_beta, *, kernel_size, padding,
                tile_hw=None):
    """x: (N, C_in, H, W) NCHW, conv_w: (C_out, C_in, kh, kw). Returns NCHW."""
    # Conv bias is exactly cancelled by the train-mode BN mean subtraction.
    # (If this kernel is ever reused with eval-mode running stats, restore the bias.)
    del conv_b
    n, c_in, h, w = x.shape
    c_out = conv_w.shape[0]
    kh = kw = kernel_size

    patches, ho, wo = _extract_patches(x, kh, kw, padding)   # (N, K, HW)
    _, k_dim, hw = patches.shape
    if tile_hw is None:
        tile_hw = _choose_tile_hw(hw, k_dim, c_out)
    hw_pad = _round_up(hw, tile_hw)
    if hw_pad != hw:
        # Zero columns contribute zero to sum / sum-of-squares (no bias), so stats
        # stay exact as long as we divide by the true element count below.
        patches = jnp.pad(patches, ((0, 0), (0, 0), (0, hw_pad - hw)))
    hw_tiles = hw_pad // tile_hw

    w_mat = conv_w.reshape(c_out, c_in * kh * kw)             # (C_out, K)

    # ---- Pass 1: conv matmul + per-tile batch statistics --------------------
    y, psum, psq = pl.pallas_call(
        _conv_stats_kernel,
        out_shape=(
            jax.ShapeDtypeStruct((n, c_out, hw_pad), jnp.float32),
            jax.ShapeDtypeStruct((n, hw_tiles, c_out, 1), jnp.float32),
            jax.ShapeDtypeStruct((n, hw_tiles, c_out, 1), jnp.float32),
        ),
        grid_spec=pltpu.PrefetchScalarGridSpec(
            num_scalar_prefetch=0,
            grid=(n, hw_tiles),
            in_specs=[
                pl.BlockSpec((1, k_dim, tile_hw), lambda i, j: (i, 0, j)),
                pl.BlockSpec((c_out, k_dim), lambda i, j: (0, 0)),
            ],
            out_specs=(
                pl.BlockSpec((1, c_out, tile_hw), lambda i, j: (i, 0, j)),
                pl.BlockSpec((1, 1, c_out, 1), lambda i, j: (i, j, 0, 0)),
                pl.BlockSpec((1, 1, c_out, 1), lambda i, j: (i, j, 0, 0)),
            )),
        compiler_params=pltpu.CompilerParams(
            dimension_semantics=("parallel", "parallel"),
            vmem_limit_bytes=_VMEM_LIMIT),
    )(patches, w_mat)

    # Fold BatchNorm (biased train-mode stats) into per-channel scale/shift.
    inv_m = 1.0 / float(n * hw)
    sum_y = jnp.sum(psum, axis=(0, 1))                        # (C_out, 1)
    sum_y2 = jnp.sum(psq, axis=(0, 1))
    mean = sum_y * inv_m
    var = jnp.maximum(sum_y2 * inv_m - mean * mean, 0.0)
    scale = bn_gamma.reshape(c_out, 1) * lax.rsqrt(var + _BN_EPS)
    shift = bn_beta.reshape(c_out, 1) - mean * scale

    # ---- Pass 2: normalize + sigmoid (reads only y, emits NCHW directly) ----
    out_flat = pl.pallas_call(
        _bn_sigmoid_kernel,
        out_shape=jax.ShapeDtypeStruct((n, c_out, hw_pad), jnp.float32),
        grid_spec=pltpu.PrefetchScalarGridSpec(
            num_scalar_prefetch=0,
            grid=(n, hw_tiles),
            in_specs=[
                pl.BlockSpec((1, c_out, tile_hw), lambda i, j: (i, 0, j)),
                pl.BlockSpec((c_out, 1), lambda i, j: (0, 0)),
                pl.BlockSpec((c_out, 1), lambda i, j: (0, 0)),
            ],
            out_specs=pl.BlockSpec((1, c_out, tile_hw), lambda i, j: (i, 0, j))),
        compiler_params=pltpu.CompilerParams(
            dimension_semantics=("parallel", "parallel"),
            vmem_limit_bytes=_VMEM_LIMIT),
    )(y, scale, shift)

    if hw_pad != hw:
        out_flat = out_flat[:, :, :hw]
    # (N, C_out, Ho*Wo) -> (N, C_out, Ho, Wo): pure reshape, no transpose pass.
    return out_flat.reshape(n, c_out, ho, wo)


def _reference(x, conv_w, conv_b, bn_gamma, bn_beta, kernel_size, padding):
    y = lax.conv_general_dilated(
        x, conv_w, window_strides=(1, 1),
        padding=[(padding, padding), (padding, padding)],
        dimension_numbers=("NCHW", "OIHW", "NCHW"))
    y = y + conv_b.reshape(1, -1, 1, 1)
    mean = jnp.mean(y, axis=(0, 2, 3), keepdims=True)
    var = jnp.mean((y - mean) ** 2, axis=(0, 2, 3), keepdims=True)
    y_hat = (y - mean) / jnp.sqrt(var + _BN_EPS)
    z = bn_gamma.reshape(1, -1, 1, 1) * y_hat + bn_beta.reshape(1, -1, 1, 1)
    return jax.nn.sigmoid(z)


if __name__ == "__main__":
    # ASB(in_channels=4, out_channels=8, kernel_size=3, padding=1)
    N, C_IN, H, W = 2, 4, 16, 16
    C_OUT, KSIZE, PAD = 8, 3, 1

    key = jax.random.PRNGKey(0)
    kx, kw_, kb = jax.random.split(key, 3)

    x = jax.random.normal(kx, (N, C_IN, H, W), dtype=jnp.float32)

    # Deterministic init mimicking PyTorch Conv2d / BatchNorm2d defaults.
    fan_in = C_IN * KSIZE * KSIZE
    bound = fan_in ** -0.5
    conv_w = jax.random.uniform(kw_, (C_OUT, C_IN, KSIZE, KSIZE),
                                minval=-bound, maxval=bound, dtype=jnp.float32)
    conv_b = jax.random.uniform(kb, (C_OUT,), minval=-bound, maxval=bound,
                                dtype=jnp.float32)
    bn_gamma = jnp.ones((C_OUT,), dtype=jnp.float32)
    bn_beta = jnp.zeros((C_OUT,), dtype=jnp.float32)

    # tile_hw=128 -> HW=256 splits into 2 tiles per image, exercising the 2-D
    # (n, hw_tiles) grid and per-tile stats reduction even at this small size.
    out = asb_forward(x, conv_w, conv_b, bn_gamma, bn_beta,
                      kernel_size=KSIZE, padding=PAD, tile_hw=128)
    out = jax.block_until_ready(out)

    ref = _reference(x, conv_w, conv_b, bn_gamma, bn_beta, KSIZE, PAD)
    assert out.shape == (N, C_OUT, H, W)
    assert jnp.allclose(out, ref, atol=1e-5, rtol=1e-5)

    print("KERNEL_OK")
</pallas_src>

<mosaic_0001>
module attributes {stable_mosaic.version = 11 : i64} {
  func.func @_conv_stats_kernel(%arg0: i32, %arg1: i32, %arg2: memref<1x36x128xf32, #tpu.memory_space<vmem>>, %arg3: memref<8x36xf32, #tpu.memory_space<vmem>>, %arg4: memref<1x8x128xf32, #tpu.memory_space<vmem>>, %arg5: memref<1x1x8x1xf32, #tpu.memory_space<vmem>>, %arg6: memref<1x1x8x1xf32, #tpu.memory_space<vmem>>) attributes {dimension_semantics = [#tpu.dimension_semantics<parallel>, #tpu.dimension_semantics<parallel>], iteration_bounds = array<i64: 2, 2>, scalar_prefetch = 0 : i64, scratch_operands = 0 : i64, tpu.core_type = #tpu.core_type<tc>, window_params = [{transform_indices = @transform_0, window_bounds = array<i64: 1, 36, 128>}, {pipeline_mode = #tpu.pipeline_mode<synchronous>, transform_indices = @transform_1, window_bounds = array<i64: 8, 36>}, {transform_indices = @transform_2, window_bounds = array<i64: 1, 8, 128>}, {transform_indices = @transform_3, window_bounds = array<i64: 1, 1, 8, 1>}, {transform_indices = @transform_4, window_bounds = array<i64: 1, 1, 8, 1>}]} {
    %c0 = arith.constant 0 : index
    %c0_0 = arith.constant 0 : index
    %0 = vector.load %arg3[%c0, %c0_0] : memref<8x36xf32, #tpu.memory_space<vmem>>, vector<8x36xf32>
    %c0_1 = arith.constant 0 : index
    %c0_2 = arith.constant 0 : index
    %c0_3 = arith.constant 0 : index
    %1 = vector.load %arg2[%c0_1, %c0_2, %c0_3] : memref<1x36x128xf32, #tpu.memory_space<vmem>>, vector<1x36x128xf32>
    %2 = vector.shape_cast %1 : vector<1x36x128xf32> to vector<36x128xf32>
    %cst = arith.constant dense<0.000000e+00> : vector<8x128xf32>
    %3 = tpu.matmul %0, %2, %cst {dimension_numbers = #tpu.dot_dimension_numbers<[1], [0], [0], [1], [0, 0, 1, 1], [], []>} : vector<8x36xf32>, vector<36x128xf32>, vector<8x128xf32> -> vector<8x128xf32>
    %c0_4 = arith.constant 0 : index
    %c0_5 = arith.constant 0 : index
    %c0_6 = arith.constant 0 : index
    %4 = vector.load %arg4[%c0_4, %c0_5, %c0_6] : memref<1x8x128xf32, #tpu.memory_space<vmem>>, vector<1x8x128xf32>
    %5 = vector.shape_cast %4 : vector<1x8x128xf32> to vector<8x128xf32>
    %6 = vector.shape_cast %3 : vector<8x128xf32> to vector<1x8x128xf32>
    tpu.vector_store %arg4[%c0_4, %c0_5, %c0_6], %6 {strides = array<i32>} : memref<1x8x128xf32, #tpu.memory_space<vmem>>, vector<1x8x128xf32>,
    %cst_7 = arith.constant dense<0.000000e+00> : vector<8xf32>
    %7 = vector.multi_reduction <add>, %3, %cst_7 [1] : vector<8x128xf32> to vector<8xf32>
    %8 = vector.shape_cast %7 : vector<8xf32> to vector<8x1xf32>
    %9 = vector.shape_cast %8 : vector<8x1xf32> to vector<1x1x8x1xf32>
    %c0_8 = arith.constant 0 : index
    %c0_9 = arith.constant 0 : index
    %c0_10 = arith.constant 0 : index
    %c0_11 = arith.constant 0 : index
    %10 = vector.load %arg5[%c0_8, %c0_9, %c0_10, %c0_11] : memref<1x1x8x1xf32, #tpu.memory_space<vmem>>, vector<1x1x8x1xf32>
    tpu.vector_store %arg5[%c0_8, %c0_9, %c0_10, %c0_11], %9 {strides = array<i32>} : memref<1x1x8x1xf32, #tpu.memory_space<vmem>>, vector<1x1x8x1xf32>,
    %11 = arith.mulf %3, %3 : vector<8x128xf32>
    %cst_12 = arith.constant dense<0.000000e+00> : vector<8xf32>
    %12 = vector.multi_reduction <add>, %11, %cst_12 [1] : vector<8x128xf32> to vector<8xf32>
    %13 = vector.shape_cast %12 : vector<8xf32> to vector<8x1xf32>
    %14 = vector.shape_cast %13 : vector<8x1xf32> to vector<1x1x8x1xf32>
    %c0_13 = arith.constant 0 : index
    %c0_14 = arith.constant 0 : index
    %c0_15 = arith.constant 0 : index
    %c0_16 = arith.constant 0 : index
    %15 = vector.load %arg6[%c0_13, %c0_14, %c0_15, %c0_16] : memref<1x1x8x1xf32, #tpu.memory_space<vmem>>, vector<1x1x8x1xf32>
    tpu.vector_store %arg6[%c0_13, %c0_14, %c0_15, %c0_16], %14 {strides = array<i32>} : memref<1x1x8x1xf32, #tpu.memory_space<vmem>>, vector<1x1x8x1xf32>,
    return
  }
  func.func @transform_0(%arg0: i32, %arg1: i32) -> (i32, i32, i32) {
    %c0_i32 = arith.constant 0 : i32
    %c0_i32_0 = arith.constant 0 : i32
    return %arg0, %c0_i32, %arg1 : i32, i32, i32
  }
  func.func @transform_1(%arg0: i32, %arg1: i32) -> (i32, i32) {
    %c0_i32 = arith.constant 0 : i32
    %c0_i32_0 = arith.constant 0 : i32
    %c0_i32_1 = arith.constant 0 : i32
    return %c0_i32, %c0_i32_0 : i32, i32
  }
  func.func @transform_2(%arg0: i32, %arg1: i32) -> (i32, i32, i32) {
    %c0_i32 = arith.constant 0 : i32
    %c0_i32_0 = arith.constant 0 : i32
    return %arg0, %c0_i32, %arg1 : i32, i32, i32
  }
  func.func @transform_3(%arg0: i32, %arg1: i32) -> (i32, i32, i32, i32) {
    %c0_i32 = arith.constant 0 : i32
    %c0_i32_0 = arith.constant 0 : i32
    %c0_i32_1 = arith.constant 0 : i32
    return %arg0, %arg1, %c0_i32, %c0_i32_0 : i32, i32, i32, i32
  }
  func.func @transform_4(%arg0: i32, %arg1: i32) -> (i32, i32, i32, i32) {
    %c0_i32 = arith.constant 0 : i32
    %c0_i32_0 = arith.constant 0 : i32
    %c0_i32_1 = arith.constant 0 : i32
    return %arg0, %arg1, %c0_i32, %c0_i32_0 : i32, i32, i32, i32
  }
}

module attributes {stable_mosaic.version = 11 : i64} {
  func.func @_bn_sigmoid_kernel(%arg0: i32, %arg1: i32, %arg2: memref<1x8x128xf32, #tpu.memory_space<vmem>>, %arg3: memref<8x1xf32, #tpu.memory_space<vmem>>, %arg4: memref<8x1xf32, #tpu.memory_space<vmem>>, %arg5: memref<1x8x128xf32, #tpu.memory_space<vmem>>) attributes {dimension_semantics = [#tpu.dimension_semantics<parallel>, #tpu.dimension_semantics<parallel>], iteration_bounds = array<i64: 2, 2>, scalar_prefetch = 0 : i64, scratch_operands = 0 : i64, tpu.core_type = #tpu.core_type<tc>, window_params = [{transform_indices = @transform_0, window_bounds = array<i64: 1, 8, 128>}, {pipeline_mode = #tpu.pipeline_mode<synchronous>, transform_indices = @transform_1, window_bounds = array<i64: 8, 1>}, {pipeline_mode = #tpu.pipeline_mode<synchronous>, transform_indices = @transform_2, window_bounds = array<i64: 8, 1>}, {transform_indices = @transform_3, window_bounds = array<i64: 1, 8, 128>}]} {
    %c0 = arith.constant 0 : index
    %c0_0 = arith.constant 0 : index
    %c0_1 = arith.constant 0 : index
    %0 = vector.load %arg2[%c0, %c0_0, %c0_1] : memref<1x8x128xf32, #tpu.memory_space<vmem>>, vector<1x8x128xf32>
    %1 = vector.shape_cast %0 : vector<1x8x128xf32> to vector<8x128xf32>
    %c0_2 = arith.constant 0 : index
    %c0_3 = arith.constant 0 : index
    %2 = vector.load %arg3[%c0_2, %c0_3] : memref<8x1xf32, #tpu.memory_space<vmem>>, vector<8x1xf32>
    %3 = vector.broadcast %2 : vector<8x1xf32> to vector<8x128xf32>
    %4 = arith.mulf %1, %3 : vector<8x128xf32>
    %c0_4 = arith.constant 0 : index
    %c0_5 = arith.constant 0 : index
    %5 = vector.load %arg4[%c0_4, %c0_5] : memref<8x1xf32, #tpu.memory_space<vmem>>, vector<8x1xf32>
    %6 = vector.broadcast %5 : vector<8x1xf32> to vector<8x128xf32>
    %7 = arith.addf %4, %6 : vector<8x128xf32>
    %cst = arith.constant 0.000000e+00 : f32
    %8 = vector.broadcast %cst : f32 to vector<8x128xf32>
    %9 = arith.subf %8, %7 : vector<8x128xf32>
    %10 = math.exp %9 : vector<8x128xf32>
    %cst_6 = arith.constant 1.000000e+00 : f32
    %11 = vector.broadcast %cst_6 : f32 to vector<8x128xf32>
    %12 = arith.addf %11, %10 : vector<8x128xf32>
    %13 = tpu.reciprocal %12 : vector<8x128xf32> -> vector<8x128xf32>
    %c0_7 = arith.constant 0 : index
    %c0_8 = arith.constant 0 : index
    %c0_9 = arith.constant 0 : index
    %14 = vector.load %arg5[%c0_7, %c0_8, %c0_9] : memref<1x8x128xf32, #tpu.memory_space<vmem>>, vector<1x8x128xf32>
    %15 = vector.shape_cast %14 : vector<1x8x128xf32> to vector<8x128xf32>
    %16 = vector.shape_cast %13 : vector<8x128xf32> to vector<1x8x128xf32>
    tpu.vector_store %arg5[%c0_7, %c0_8, %c0_9], %16 {strides = array<i32>} : memref<1x8x128xf32, #tpu.memory_space<vmem>>, vector<1x8x128xf32>,
    return
  }
  func.func @transform_0(%arg0: i32, %arg1: i32) -> (i32, i32, i32) {
    %c0_i32 = arith.constant 0 : i32
    %c0_i32_0 = arith.constant 0 : i32
    return %arg0, %c0_i32, %arg1 : i32, i32, i32
  }
  func.func @transform_1(%arg0: i32, %arg1: i32) -> (i32, i32) {
    %c0_i32 = arith.constant 0 : i32
    %c0_i32_0 = arith.constant 0 : i32
    %c0_i32_1 = arith.constant 0 : i32
    return %c0_i32, %c0_i32_0 : i32, i32
  }
  func.func @transform_2(%arg0: i32, %arg1: i32) -> (i32, i32) {
    %c0_i32 = arith.constant 0 : i32
    %c0_i32_0 = arith.constant 0 : i32
    %c0_i32_1 = arith.constant 0 : i32
    return %c0_i32, %c0_i32_0 : i32, i32
  }
  func.func @transform_3(%arg0: i32, %arg1: i32) -> (i32, i32, i32) {
    %c0_i32 = arith.constant 0 : i32
    %c0_i32_0 = arith.constant 0 : i32
    return %arg0, %c0_i32, %arg1 : i32, i32, i32
  }
}

</mosaic_0001>

<bundles_post_ra>
// kernel: asb_forward.2
= control target key start
LH: loop header
LB: loop body
LE: loop exit
PB: predicated region body
PF: predicated region fallthrough
CT: control target
= control target key end

     0   :  { %s775_s15 = smov 0   ;;  %s777_s16 = smov 0   ;;  %s875_s0 = inlined_call_operand.vmem [shape: f32[2,36,256], index: 0, kind: input, shape index: {}]   ;;  %s876_s1 = inlined_call_operand.vmem [shape: f32[8,36], index: 1, kind: input, shape index: {}]   ;;  %s877_s2 = inlined_call_operand.vmem [shape: f32[2,8,256], index: 2, kind: output, shape index: {0}]   ;;  %s878_s3 = inlined_call_operand.vmem [shape: f32[2,2,8,1], index: 3, kind: output, shape index: {1}]   ;;  %s879_s4 = inlined_call_operand.vmem [shape: f32[2,2,8,1], index: 4, kind: output, shape index: {2}]  }
   0x1   :  { %s779_s17 = smov 0   ;;  %s781_s18 = smov 0  }
   0x2   :  { %s783_s19 = smov 0   ;;  %s785_s20 = smov 0  }
   0x3   :  { %s787_s21 = smov 0  }
   0x4 LB: > { %s24_s22 = sadd.s32 1, %s737_s19  ;;  %s27_s23 = sadd.s32 1, %s741_s20  ;;  %s745_s21 = sphi %s787_s21, %s15_s21   ;;  %s741_s20 = sphi %s785_s20, %s885_s20   ;;  %s737_s19 = sphi %s783_s19, %s884_s19   ;;  %s733_s18 = sphi %s781_s18, %s883_s18   ;;  %s729_s17 = sphi %s779_s17, %s882_s17   ;;  %s725_s16 = sphi %s777_s16, %s881_s16   ;;  %s721_s15 = sphi %s775_s15, %s880_s15  }
   0x5   : > { %p25_p0 = scmp.ge.s32.totalorder %s24_s22, 2  ;;  %p43_p1 = scmp.ne.s32.totalorder %s725_s16, %s721_s15 }
   0x6   : > { %p44_p2 = scmp.eq.s32.totalorder %s745_s21, 0  ;;  %s36_s27 = sadd.s32 1, %s725_s16 }
   0x7   : > { %s887_s22 = smov (%p25_p0, %s24_s22), 0  ;;  %s889_s23 = smov (!%p25_p0, %s27_s23), %s741_s20 }
   0x8   : > { %p45_p3 = por %p44_p2, %p43_p1  ;;  %p29_p4 = scmp.ge.s32.totalorder %s889_s23, 2 }
   0x9   : > { %s32_s24 = ssub.s32 %s737_s19, %s887_s22  ;;  %p591_p6 = scmp.ge.s32.totalorder %s745_s21, 4 }
   0xa   : > { %s891_s23 = smov (%p29_p4, %s889_s23), 0 }
   0xb   : > { %s31_s25 = ssub.s32 %s741_s20, %s891_s23  ;;  %177 = sbr.rel (%p591_p6) target bundleno = 28 (0x1c), region = 20 }
   0xc   : > { %s33_s26 = sor.u32 %s32_s24, %s31_s25 }
   0xd   : > { %p34_p5 = scmp.eq.s32.totalorder %s33_s26, 0 }
   0xf   : > { %s826_s28 = scalar_select %p34_p5, %s725_s16, %s36_s27  }
  0x12   : > { %180 = sbr.rel (!%p45_p3) target bundleno = 28 (0x1c), region = 24  ;;  %s182_s29 = sand.u32 (%p45_p3), 1, %s725_s16  }
  0x13   : > { %s630_s30 = smul.u32 (%p45_p3), 10, %s741_s20 }
  0x14   : > { %s629_s5 = smul.u32 (%p45_p3), 40, %s182_s29 }
  0x15   : > { %s186_s6 = sadd.s32 (%p45_p3), %s737_s19, %s630_s30 }
  0x16   : > { %s592_s7 = sshll.u32 (%p45_p3), %s186_s6, 3  ;;  %s184_s11 = scalar_lea.vmem (%p45_p3), [#allocation2], %s629_s5 }
  0x17   : > { %s188_s10 = scalar_lea.vmem (%p45_p3), %s875_s0, %s592_s7 }
  0x18   : > { %v224_v0 = vld [vmem:[%s188_s10] sm:$0xff] (%p45_p3)  ;;  %v226_v1 = vld [vmem:[%s188_s10 + $0x10] sm:$0xff] (%p45_p3) }
  0x19   : > { %v228_v2 = vld [vmem:[%s188_s10 + $0x20] sm:$0xff]  ;;  %225 = vst [vmem:[%s184_s11] sm:$0xff] %v224_v0  ;;  %227 = vst [vmem:[%s184_s11 + $0x8] sm:$0xff] %v226_v1  ;;  %v230_v3 = vld [vmem:[%s188_s10 + $0x30] sm:$0xff] }
  0x1a   : > { %229 = vst [vmem:[%s184_s11 + $0x10] sm:$0xff] %v228_v2  ;;  %v232_v4 = vld [vmem:[%s188_s10 + $0x40] sm:$0xff]  ;;  %231 = vst [vmem:[%s184_s11 + $0x18] sm:$0xff] %v230_v3 }
  0x1b   : > { %233 = vst [vmem:[%s184_s11 + $0x20] sm:$0xff] %v232_v4 }
  0x1c PF: > { %p593_p7 = scmp.ge.s32.totalorder %s745_s21, 1  ;;  %p238_p8 = scmp.lt.s32.totalorder %s745_s21, 5 }
  0x1e   : > { %p239_p9 = pnand %p593_p7, %p238_p8 }
  0x1f   : > { %s245_s12 = sand.u32 (!%p239_p9), 1, %s721_s15   ;;  %v747_v5 = vmov (!%p239_p9), 0.0|0.0   ;;  %vm748_vm0 = vmmov (!%p239_p9), 0   ;;  %v749_v6 = vmov (!%p239_p9), 0.0   ;;  %vm323_vm1 = vcmask (!%p239_p9), 1043456   ;;  %v313_v14 = vld [vmem:[%s876_s1] sm:$0xff] (!%p239_p9) }
  0x20   : > { %242 = sbr.rel (%p239_p9) target bundleno = 407 (0x197), region = 62  ;;  %623 = vmatprep.subr.bf16.mxu0 (!%p239_p9), %v747_v5  ;;  %620 = vmatprep.mubr.msk.f32.mxu0 (!%p239_p9), %vm748_vm0, %v749_v6  ;;  %vm319_vm2 = vcmask (!%p239_p9), 293888   ;;  %p289_p10 = scmp.lt.s32.totalorder (!%p239_p9), %s733_s18, 1  ;;  %vm400_vm3 = vcmask (!%p239_p9), 7168  }
  0x21   : > { %s631_s13 = smul.u32 (!%p239_p9), 40, %s245_s12  ;;  %p291_p11 = scmp.lt.s32.totalorder (!%p239_p9), %s729_s17, 1 }
  0x23   : > { %s247_s14 = scalar_lea.vmem (!%p239_p9), [#allocation2], %s631_s13 }
  0x24   : > { %v314_v7 = vld [vmem:[%s247_s14] sm:$0xff] (!%p239_p9)  ;;  %v315_v8 = vld [vmem:[%s247_s14 + $0x8] sm:$0xff] (!%p239_p9)  ;;  %v316_v9 = vld [vmem:[%s247_s14 + $0x10] sm:$0xff] (!%p239_p9) }
  0x25   : > { %v624_v10 = vpack.c.bf16 (!%p239_p9), %v315_v8, %v314_v7  ;;  %v317_v11 = vld [vmem:[%s247_s14 + $0x18] sm:$0xff] (!%p239_p9)  ;;  %v318_v13 = vld [vmem:[%s247_s14 + $0x20] sm:$0xf] (!%p239_p9) }
  0x26   : > { %v627_v12 = vpack.c.bf16 (!%p239_p9), %v317_v11, %v316_v9 }
  0x27   : > { %625 = vmatpush3.bf16.msra.mxu0 %v624_v10  ;;  %s893_s18 = smov (!%p289_p10, %s733_s18), 1  ;;  %s895_s17 = smov (!%p291_p11, %s729_s17), 1 }
  0x28   : > { %626 = vmatprep.subr.bf16.mxu0 %v747_v5  ;;  %s594_s25 = sshll.u32 %s893_s18, 1 }
  0x29   : > { %s294_s26 = sadd.s32 %s594_s25, %s895_s17 }
  0x2a   : > { %s595_s27 = sshll.u32 %s294_s26, 3 }
  0x2b   : > { %628 = vmatpush3.bf16.msra.mxu0 %v627_v12  ;;  %s296_s5 = scalar_lea.vmem %s877_s2, %s595_s27  ;;  %s304_s8 = scalar_lea.vmem %s878_s3, %s595_s27 }
  0x2c   : > { %618 = vmatprep.subr.mxu0 %v749_v6  ;;  %s312_s9 = scalar_lea.vmem %s879_s4, %s595_s27 }
  0x2f   : > { %619 = vmatpush3.msk.msra.mxu0 %vm323_vm1, %v318_v13 }
  0x30   : > { %621 = vmatmul.mubr.msk.f32.vlgmr.msra.gmra.mrb[0].mxu0 %vm319_vm2, %v313_v14 }
 0x103   : > { %v393_v15 = vpop.f32.mrb[0].mxu0 }
 0x104   : > { %397 = vst [vmem:[%s296_s5] sm:$0xff] %v393_v15  ;;  %398 = vadd.xlane.f32.xlu0 %v393_v15  ;;  %v622_v16 = vpop.f32.mrb[1].mxu0  ;;  %v402_v17 = vmul.f32 %v393_v15, %v393_v15 }
 0x108   : > { %403 = vadd.xlane.f32.xlu0 %v402_v17 }
 0x191   : > { %v399_v18 = vpop.xlane.xlu0 %398 }
 0x192   : > { %401 = vst.msk [vmem:[%s304_s8] sm:$0xff] %vm400_vm3, %v399_v18 }
 0x195   : > { %v404_v19 = vpop.xlane.xlu0 %403 }
 0x196   : > { %405 = vst.msk [vmem:[%s312_s9] sm:$0xff] %vm400_vm3, %v404_v19 }
 0x197 PF: > { %s15_s21 = sadd.s32 1, %s745_s21   ;;  %s880_s15 = smov %s725_s16 }
 0x198   : > { %p12_p12 = scmp.ge.s32.totalorder %s15_s21, 6   ;;  %s881_s16 = smov %s826_s28 }
 0x199   : > { %s882_s17 = smov %s737_s19  ;;  %s883_s18 = smov %s741_s20 }
 0x19a   : > { %s884_s19 = smov %s887_s22  ;;  %s885_s20 = smov %s891_s23 }
 0x19b   :  { %14 = sbr.rel (!%p12_p12) target bundleno = 4 (0x4), region = 125 }

// kernel: asb_forward.3
= control target key start
LH: loop header
LB: loop body
LE: loop exit
PB: predicated region body
PF: predicated region fallthrough
CT: control target
= control target key end

     0   :  { %s427_s12 = smov 0   ;;  %s429_s13 = smov 0   ;;  %s484_s0 = inlined_call_operand.vmem [shape: f32[2,8,256], index: 0, kind: input, shape index: {}]   ;;  %s485_s1 = inlined_call_operand.vmem [shape: f32[8,1], index: 1, kind: input, shape index: {}]   ;;  %s486_s2 = inlined_call_operand.vmem [shape: f32[8,1], index: 2, kind: input, shape index: {}]   ;;  %s487_s3 = inlined_call_operand.vmem [shape: f32[2,8,256], index: 3, kind: output, shape index: {}]  }
   0x1   :  { %s431_s14 = smov 0   ;;  %s433_s15 = smov 0  }
   0x2   :  { %s435_s16 = smov 0  }
   0x3 LB: > { %s22_s17 = sadd.s32 1, %s396_s14  ;;  %s25_s18 = sadd.s32 1, %s400_s15  ;;  %s404_s16 = sphi %s435_s16, %s13_s16   ;;  %s400_s15 = sphi %s433_s15, %s491_s15   ;;  %s396_s14 = sphi %s431_s14, %s490_s14   ;;  %s392_s13 = sphi %s429_s13, %s489_s13   ;;  %s388_s12 = sphi %s427_s12, %s488_s12  }
   0x4   : > { %p23_p0 = scmp.ge.s32.totalorder %s22_s17, 2  ;;  %p313_p1 = scmp.ge.s32.totalorder %s404_s16, 1 }
   0x5   : > { %p156_p2 = scmp.lt.s32.totalorder %s404_s16, 5 }
   0x6   : > { %s493_s17 = smov (%p23_p0, %s22_s17), 0  ;;  %s495_s18 = smov (!%p23_p0, %s25_s18), %s400_s15 }
   0x7   : > { %p157_p3 = pnand %p313_p1, %p156_p2  ;;  %p27_p4 = scmp.ge.s32.totalorder %s495_s18, 2 }
   0x8   : > { %v203_v0 = vld [vmem:[%s485_s1] sm:$0xff] (!%p157_p3)  ;;  %v406_v1 = vmov (!%p157_p3), 0   ;;  %p186_p5 = scmp.lt.s32.totalorder (!%p157_p3), %s392_s13, 1  ;;  %p188_p6 = scmp.lt.s32.totalorder (!%p157_p3), %s388_s12, 1 }
   0x9   : > { %s497_s18 = smov (%p27_p4, %s495_s18), 0  ;;  %160 = sbr.rel (%p157_p3) target bundleno = 174 (0xae), region = 32 }
   0xa   : > { %361 = vset.pattern.permute.xlu0 (!%p157_p3), %v406_v1  ;;  %v210_v2 = vld [vmem:[%s486_s2] sm:$0xff] (!%p157_p3) }
   0xb   : > { %206 = vperm.xlu0 (!%p157_p3), %361, %v203_v0  }
   0xf   : > { %213 = vperm.xlu0 (!%p157_p3), %361, %v210_v2  }
  0x10   : > { %s499_s13 = smov (!%p186_p5, %s392_s13), 1  ;;  %s501_s12 = smov (!%p188_p6, %s388_s12), 1 }
  0x11   : > { %s314_s23 = sshll.u32 %s499_s13, 1 }
  0x12   : > { %s191_s24 = sadd.s32 %s314_s23, %s501_s12 }
  0x13   : > { %s315_s25 = sshll.u32 %s191_s24, 3 }
  0x14   : > { %s193_s28 = scalar_lea.vmem %s484_s0, %s315_s25  ;;  %s201_s4 = scalar_lea.vmem %s487_s3, %s315_s25 }
  0x15   : > { %v202_v4 = vld [vmem:[%s193_s28] sm:$0xff] }
  0x8a   : > { %v207_v3 = vpop.permute.xlu0 %206 }
  0x8b   : > { %v209_v5 = vmul.f32 %v207_v3, %v202_v4 }
  0x8e   : > { %v214_v6 = vpop.permute.xlu0 %213 }
  0x8f   : > { %v216_v7 = vadd.f32 %v214_v6, %v209_v5 }
  0x91   : > { %v217_v8 = vsub.f32 0.0, %v216_v7 }
  0x93   : > { %v218_v9 = vmul.f32 1.442695, %v217_v8 }
  0x95   : > { %362 = vpow2.f32 %v218_v9 }
  0x9f   : > { %v363_v10 = vpop.eup %362 }
  0xa0   : > { %v220_v11 = vadd.f32 1.0, %v363_v10 }
  0xa2   : > { %364 = vrcp.f32 %v220_v11 }
  0xac   : > { %v365_v12 = vpop.eup %364 }
  0xad   : > { %222 = vst [vmem:[%s201_s4] sm:$0xff] %v365_v12 }
  0xae PF: > { %s13_s16 = sadd.s32 1, %s404_s16   ;;  %s488_s12 = smov %s396_s14 }
  0xaf   : > { %p10_p7 = scmp.ge.s32.totalorder %s13_s16, 6   ;;  %s489_s13 = smov %s400_s15 }
  0xb0   : > { %s490_s14 = smov %s493_s17  ;;  %s491_s15 = smov %s497_s18 }
  0xb1   :  { %12 = sbr.rel (!%p10_p7) target bundleno = 3 (0x3), region = 62 }

</bundles_post_ra>
